<compile_context>
chip_gen: v7x
topology: tpu7x:2x2x1
jax: 0.10.0
libtpu: 0.0.40
codegen_flags: <defaults>
</compile_context>

<pallas_src>
import functools

import jax
import jax.numpy as jnp
from jax import lax
from jax.experimental import pallas as pl
from jax.experimental.pallas import tpu as pltpu


def _round_up(x: int, m: int) -> int:
    return (x + m - 1) // m * m


def _sublane_align(dtype) -> int:
    """Rows of the native (sublane x 128 lane) tile for this dtype."""
    return max(8, 32 // jnp.dtype(dtype).itemsize)


def _largest_aligned_divisor(n: int, align: int, cap: int) -> int:
    """Largest divisor of `n` that is a multiple of `align` and <= cap."""
    best, d = align, align
    limit = min(n, cap)
    while d <= limit:
        if n % d == 0:
            best = d
        d += align
    return best


def _dice_counts_kernel(x_ref, t_ref, out_ref, *, C, TR, CH, HW, cls, needs_mask):
    """Per-(image, spatial-tile) partial counts.

    x_ref:   (1, C, TR, 128) logits tile (native dtype)
    t_ref:   (1, TR, 128) target tile (native integer dtype)
    out_ref: (1, 1, 24, 128) f32 -- rows 0:8 intersection, 8:16 seg, 16:24 target
    """
    n_chunks = TR // CH

    if needs_mask:
        # Hoisted out of the chunk loop (JAX does not CSE broadcast iotas).
        flat = (lax.broadcasted_iota(jnp.int32, (CH, 128), 0) * 128
                + lax.broadcasted_iota(jnp.int32, (CH, 128), 1))
        tile_base = pl.program_id(1) * (TR * 128)

    def chunk_masks(row0):
        x_cls = x_ref[0, cls, pl.ds(row0, CH), :]
        seg = None
        for c in range(C):
            if c == cls:
                continue
            x_c = x_ref[0, c, pl.ds(row0, CH), :]
            # First-occurrence argmax: x[cls] strictly beats earlier channels,
            # ties win against later ones.
            cond = (x_cls > x_c) if c < cls else (x_cls >= x_c)
            seg = cond if seg is None else jnp.logical_and(seg, cond)
        if seg is None:                      # C == 1: argmax is always 0
            seg = jnp.ones((CH, 128), dtype=jnp.bool_)
        tgt = t_ref[0, pl.ds(row0, CH), :].astype(jnp.int32) == cls
        if needs_mask:
            valid = flat < (HW - tile_base - row0 * 128)
            seg = jnp.logical_and(seg, valid)
            tgt = jnp.logical_and(tgt, valid)
        return jnp.logical_and(seg, tgt), seg, tgt

    def fold(m):
        # (CH,128) bool -> (8,128) f32 via elementwise VALU adds only (no XLU).
        return jnp.sum(m.astype(jnp.float32).reshape(CH // 8, 8, 128), axis=0)

    zero = jnp.zeros((8, 128), dtype=jnp.float32)

    def body(r, carry):
        acc_i, acc_s, acc_t = carry
        row0 = pl.multiple_of(r * CH, CH)
        inter, seg, tgt = chunk_masks(row0)
        return acc_i + fold(inter), acc_s + fold(seg), acc_t + fold(tgt)

    acc_i, acc_s, acc_t = lax.fori_loop(0, n_chunks, body, (zero, zero, zero),
                                        unroll=(n_chunks <= 8))

    out_ref[0, 0, 0:8, :] = acc_i
    out_ref[0, 0, 8:16, :] = acc_s
    out_ref[0, 0, 16:24, :] = acc_t


# Logits-tile budget per grid step; double-buffered (+ target + outputs) this
# stays inside the 16 / 32 / 32 MiB scoped-VMEM defaults of v5e / v6e / v7x.
_TILE_BYTES = 4 * 1024 * 1024


@functools.partial(jax.jit, static_argnums=(2,))
def dice_score(logits: jax.Array, target: jax.Array, cls: int) -> jax.Array:
    """Pallas implementation of DiceScore.forward.

    logits: (N, C, H, W) floating-point scores
    target: (N, H, W) integer class labels
    cls:    python int class id (static)
    """
    N, C, H, W = logits.shape
    assert target.shape == (N, H, W), (logits.shape, target.shape)
    cls = int(cls)
    if not 0 <= cls < C:
        raise ValueError(f"cls={cls} is out of range for C={C} channels")
    HW = H * W

    if not jnp.issubdtype(target.dtype, jnp.integer):
        target = target.astype(jnp.int32)

    x_item = jnp.dtype(logits.dtype).itemsize
    t_item = jnp.dtype(target.dtype).itemsize
    # Rows per chunk = native sublane tile of the widest-alignment operand.
    align = max(_sublane_align(logits.dtype), _sublane_align(target.dtype))

    row_bytes = C * 128 * x_item
    budget_rows = max(align, (_TILE_BYTES // row_bytes) // align * align)

    r_min = pl.cdiv(HW, 128)

    if HW % 128 == 0 and r_min >= align:
        # ---- zero-copy path: reshape only (free bitcast), no padding ----
        R = r_min
        TR_div = (_largest_aligned_divisor(R, align, budget_rows)
                  if R % align == 0 else 0)
        if TR_div and TR_div * 4 >= min(budget_rows, R):
            TR, n_s, needs_mask = TR_div, R // TR_div, False      # exact tiling
        else:
            # No reasonably-sized exact divisor: let the last tile overhang the
            # array (Pallas boundary block) and mask the garbage rows instead
            # of shrinking the tile or materializing a padded copy.
            TR = min(budget_rows, (R // align) * align)
            n_s = pl.cdiv(R, TR)
            needs_mask = (n_s * TR != R)
        x = logits.reshape(N, C, R, 128)
        t = target.reshape(N, R, 128)
    else:
        # ---- ragged H*W (or tiny image): padded lane-dense fallback ----
        # TODO(synk): for large ragged inputs, emit a tile-major padded layout
        # (N, n_s, C, TR, 128) so each grid step is one contiguous DMA.
        r_pad = _round_up(r_min, align)
        TR = min(budget_rows, r_pad)
        n_s = pl.cdiv(r_pad, TR)
        needs_mask = True
        p_pad = r_pad * 128
        x = jnp.pad(logits.reshape(N, C, HW),
                    ((0, 0), (0, 0), (0, p_pad - HW))).reshape(N, C, r_pad, 128)
        t = jnp.pad(target.reshape(N, HW),
                    ((0, 0), (0, p_pad - HW))).reshape(N, r_pad, 128)

    kernel = functools.partial(_dice_counts_kernel, C=C, TR=TR, CH=align,
                               HW=HW, cls=cls, needs_mask=needs_mask)

    # Double-buffered VMEM footprint; raise the scoped limit only when a
    # pathological channel count would bust the smallest (v5e) default.
    x_tile = C * TR * 128 * x_item
    t_tile = TR * 128 * t_item
    out_tile = 24 * 128 * 4
    vmem_needed = 2 * (x_tile + t_tile + out_tile) + (1 << 20)
    cp = dict(dimension_semantics=("parallel", "parallel"))
    if vmem_needed > 12 * 2**20:
        cp["vmem_limit_bytes"] = int(min(vmem_needed, 48 * 2**20))

    counts = pl.pallas_call(
        kernel,
        out_shape=jax.ShapeDtypeStruct((N, n_s, 24, 128), jnp.float32),
        grid_spec=pltpu.PrefetchScalarGridSpec(
            num_scalar_prefetch=0,
            grid=(N, n_s),
            in_specs=[
                pl.BlockSpec((1, C, TR, 128), lambda n, s: (n, 0, s, 0)),
                pl.BlockSpec((1, TR, 128), lambda n, s: (n, s, 0)),
            ],
            out_specs=pl.BlockSpec((1, 1, 24, 128), lambda n, s: (n, s, 0, 0)),
        ),
        compiler_params=pltpu.CompilerParams(**cp),
    )(x, t)

    # Exact final reduction in plain JAX (tiny: N * n_s * 24 * 128 counts).
    parts = counts.reshape(N, n_s, 3, 8, 128).astype(jnp.int32)
    sums = jnp.sum(parts, axis=(0, 1, 3, 4))                      # (3,) int32
    intersection = sums[0].astype(jnp.float32)
    denom = (sums[1] + sums[2]).astype(jnp.float32)
    # torch returns NaN when seg_sum + target_sum == 0
    return jnp.where(denom == 0.0, jnp.nan, 2.0 * intersection / denom)


def _dice_score_ref(logits, target, cls):
    seg = jnp.argmax(logits, axis=1)
    seg_m = (seg == cls)
    tgt_m = (target == cls)
    inter = jnp.sum(jnp.logical_and(seg_m, tgt_m).astype(jnp.float32))
    s = jnp.sum(seg_m.astype(jnp.float32))
    t = jnp.sum(tgt_m.astype(jnp.float32))
    d = s + t
    return jnp.where(d == 0.0, jnp.nan, 2.0 * inter / d)


if __name__ == "__main__":
    key = jax.random.PRNGKey(0)
    k1, k2, k3, k4, k5, k6 = jax.random.split(key, 6)

    # 1) Small spec shape (exercises the padded fallback path: HW=256 -> R=2).
    N, C, H, W = 2, 4, 16, 16
    logits = jax.random.normal(k1, (N, C, H, W), dtype=jnp.float32)
    target = jax.random.randint(k2, (N, H, W), 0, C, dtype=jnp.int32)
    out = jax.block_until_ready(dice_score(logits, target, 1))
    ref = _dice_score_ref(logits, target, 1)
    assert jnp.allclose(out, ref, equal_nan=True), (out, ref)

    # 2) Zero-copy exact-tiling fast path (HW=1024 -> R=8, TR=8, no mask).
    logits2 = jax.random.normal(k3, (2, 4, 32, 32), dtype=jnp.float32)
    target2 = jax.random.randint(k4, (2, 32, 32), 0, 4, dtype=jnp.int32)
    out2 = jax.block_until_ready(dice_score(logits2, target2, 2))
    ref2 = _dice_score_ref(logits2, target2, 2)
    assert jnp.allclose(out2, ref2, equal_nan=True), (out2, ref2)

    # 3) bf16 logits + zero-copy overhanging-last-tile path
    #    (HW=2304 -> R=18, align=16, TR=16, n_s=2, masked tail).
    logits3 = jax.random.normal(k5, (1, 3, 48, 48), dtype=jnp.bfloat16)
    target3 = jax.random.randint(k6, (1, 48, 48), 0, 3, dtype=jnp.int32)
    out3 = jax.block_until_ready(dice_score(logits3, target3, 0))
    ref3 = _dice_score_ref(logits3, target3, 0)
    assert jnp.allclose(out3, ref3, equal_nan=True), (out3, ref3)

    print("KERNEL_OK")
</pallas_src>

<mosaic_0001>
module attributes {stable_mosaic.version = 11 : i64} {
  func.func @_dice_counts_kernel(%arg0: i32, %arg1: i32, %arg2: memref<1x4x8x128xf32, #tpu.memory_space<vmem>>, %arg3: memref<1x8x128xi32, #tpu.memory_space<vmem>>, %arg4: memref<1x1x24x128xf32, #tpu.memory_space<vmem>>) attributes {dimension_semantics = [#tpu.dimension_semantics<parallel>, #tpu.dimension_semantics<parallel>], iteration_bounds = array<i64: 2, 1>, scalar_prefetch = 0 : i64, scratch_operands = 0 : i64, tpu.core_type = #tpu.core_type<tc>, window_params = [{transform_indices = @transform_0, window_bounds = array<i64: 1, 4, 8, 128>}, {transform_indices = @transform_1, window_bounds = array<i64: 1, 8, 128>}, {transform_indices = @transform_2, window_bounds = array<i64: 1, 1, 24, 128>}]} {
    %0 = tpu.iota {dimensions = array<i32: 0>} : vector<8x128xi32>
    %c128_i32 = arith.constant 128 : i32
    %1 = vector.broadcast %c128_i32 : i32 to vector<8x128xi32>
    %2 = arith.muli %0, %1 : vector<8x128xi32>
    %3 = tpu.iota {dimensions = array<i32: 1>} : vector<8x128xi32>
    %4 = arith.addi %2, %3 : vector<8x128xi32>
    %c1024_i32 = arith.constant 1024 : i32
    %5 = arith.muli %arg1, %c1024_i32 : i32
    %cst = arith.constant 0.000000e+00 : f32
    %6 = vector.broadcast %cst : f32 to vector<8x128xf32>
    %c0_i32 = arith.constant 0 : i32
    %c8_i32 = arith.constant 8 : i32
    %7 = arith.muli %c0_i32, %c8_i32 : i32
    %8 = tpu.assume_multiple %7, 8 : i32
    %c0 = arith.constant 0 : index
    %c1 = arith.constant 1 : index
    %9 = arith.index_cast %8 : i32 to index
    %c0_0 = arith.constant 0 : index
    %10 = vector.load %arg2[%c0, %c1, %9, %c0_0] : memref<1x4x8x128xf32, #tpu.memory_space<vmem>>, vector<1x1x8x128xf32>
    %11 = vector.shape_cast %10 : vector<1x1x8x128xf32> to vector<8x128xf32>
    %c0_1 = arith.constant 0 : index
    %c0_2 = arith.constant 0 : index
    %12 = arith.index_cast %8 : i32 to index
    %c0_3 = arith.constant 0 : index
    %13 = vector.load %arg2[%c0_1, %c0_2, %12, %c0_3] : memref<1x4x8x128xf32, #tpu.memory_space<vmem>>, vector<1x1x8x128xf32>
    %14 = vector.shape_cast %13 : vector<1x1x8x128xf32> to vector<8x128xf32>
    %15 = arith.cmpf ogt, %11, %14 : vector<8x128xf32>
    %c0_4 = arith.constant 0 : index
    %c2 = arith.constant 2 : index
    %16 = arith.index_cast %8 : i32 to index
    %c0_5 = arith.constant 0 : index
    %17 = vector.load %arg2[%c0_4, %c2, %16, %c0_5] : memref<1x4x8x128xf32, #tpu.memory_space<vmem>>, vector<1x1x8x128xf32>
    %18 = vector.shape_cast %17 : vector<1x1x8x128xf32> to vector<8x128xf32>
    %19 = arith.cmpf oge, %11, %18 : vector<8x128xf32>
    %20 = arith.andi %15, %19 : vector<8x128xi1>
    %c0_6 = arith.constant 0 : index
    %c3 = arith.constant 3 : index
    %21 = arith.index_cast %8 : i32 to index
    %c0_7 = arith.constant 0 : index
    %22 = vector.load %arg2[%c0_6, %c3, %21, %c0_7] : memref<1x4x8x128xf32, #tpu.memory_space<vmem>>, vector<1x1x8x128xf32>
    %23 = vector.shape_cast %22 : vector<1x1x8x128xf32> to vector<8x128xf32>
    %24 = arith.cmpf oge, %11, %23 : vector<8x128xf32>
    %25 = arith.andi %20, %24 : vector<8x128xi1>
    %c0_8 = arith.constant 0 : index
    %26 = arith.index_cast %8 : i32 to index
    %c0_9 = arith.constant 0 : index
    %27 = vector.load %arg3[%c0_8, %26, %c0_9] : memref<1x8x128xi32, #tpu.memory_space<vmem>>, vector<1x8x128xi32>
    %28 = vector.shape_cast %27 : vector<1x8x128xi32> to vector<8x128xi32>
    %c1_i32 = arith.constant 1 : i32
    %29 = vector.broadcast %c1_i32 : i32 to vector<8x128xi32>
    %30 = arith.cmpi eq, %28, %29 : vector<8x128xi32>
    %c256_i32 = arith.constant 256 : i32
    %31 = arith.subi %c256_i32, %5 : i32
    %c128_i32_10 = arith.constant 128 : i32
    %32 = arith.muli %8, %c128_i32_10 : i32
    %33 = arith.subi %31, %32 : i32
    %34 = vector.broadcast %33 : i32 to vector<8x128xi32>
    %35 = arith.cmpi slt, %4, %34 : vector<8x128xi32>
    %36 = arith.andi %25, %35 : vector<8x128xi1>
    %37 = arith.andi %30, %35 : vector<8x128xi1>
    %38 = arith.andi %36, %37 : vector<8x128xi1>
    %39 = arith.extui %38 : vector<8x128xi1> to vector<8x128xi32>
    %40 = arith.sitofp %39 : vector<8x128xi32> to vector<8x128xf32>
    %41 = vector.shape_cast %40 : vector<8x128xf32> to vector<1x8x128xf32>
    %cst_11 = arith.constant dense<0.000000e+00> : vector<8x128xf32>
    %42 = vector.multi_reduction <add>, %41, %cst_11 [0] : vector<1x8x128xf32> to vector<8x128xf32>
    %43 = arith.addf %6, %42 : vector<8x128xf32>
    %44 = arith.extui %36 : vector<8x128xi1> to vector<8x128xi32>
    %45 = arith.sitofp %44 : vector<8x128xi32> to vector<8x128xf32>
    %46 = vector.shape_cast %45 : vector<8x128xf32> to vector<1x8x128xf32>
    %cst_12 = arith.constant dense<0.000000e+00> : vector<8x128xf32>
    %47 = vector.multi_reduction <add>, %46, %cst_12 [0] : vector<1x8x128xf32> to vector<8x128xf32>
    %48 = arith.addf %6, %47 : vector<8x128xf32>
    %49 = arith.extui %37 : vector<8x128xi1> to vector<8x128xi32>
    %50 = arith.sitofp %49 : vector<8x128xi32> to vector<8x128xf32>
    %51 = vector.shape_cast %50 : vector<8x128xf32> to vector<1x8x128xf32>
    %cst_13 = arith.constant dense<0.000000e+00> : vector<8x128xf32>
    %52 = vector.multi_reduction <add>, %51, %cst_13 [0] : vector<1x8x128xf32> to vector<8x128xf32>
    %53 = arith.addf %6, %52 : vector<8x128xf32>
    %c1_i32_14 = arith.constant 1 : i32
    %c0_15 = arith.constant 0 : index
    %c0_16 = arith.constant 0 : index
    %c0_17 = arith.constant 0 : index
    %c0_18 = arith.constant 0 : index
    %54 = vector.load %arg4[%c0_15, %c0_16, %c0_17, %c0_18] : memref<1x1x24x128xf32, #tpu.memory_space<vmem>>, vector<1x1x8x128xf32>
    %55 = vector.shape_cast %54 : vector<1x1x8x128xf32> to vector<8x128xf32>
    %56 = vector.shape_cast %43 : vector<8x128xf32> to vector<1x1x8x128xf32>
    tpu.vector_store %arg4[%c0_15, %c0_16, %c0_17, %c0_18], %56 {strides = array<i32>} : memref<1x1x24x128xf32, #tpu.memory_space<vmem>>, vector<1x1x8x128xf32>,
    %c0_19 = arith.constant 0 : index
    %c0_20 = arith.constant 0 : index
    %c8 = arith.constant 8 : index
    %c0_21 = arith.constant 0 : index
    %57 = vector.load %arg4[%c0_19, %c0_20, %c8, %c0_21] : memref<1x1x24x128xf32, #tpu.memory_space<vmem>>, vector<1x1x8x128xf32>
    %58 = vector.shape_cast %57 : vector<1x1x8x128xf32> to vector<8x128xf32>
    %59 = vector.shape_cast %48 : vector<8x128xf32> to vector<1x1x8x128xf32>
    tpu.vector_store %arg4[%c0_19, %c0_20, %c8, %c0_21], %59 {strides = array<i32>} : memref<1x1x24x128xf32, #tpu.memory_space<vmem>>, vector<1x1x8x128xf32>,
    %c0_22 = arith.constant 0 : index
    %c0_23 = arith.constant 0 : index
    %c16 = arith.constant 16 : index
    %c0_24 = arith.constant 0 : index
    %60 = vector.load %arg4[%c0_22, %c0_23, %c16, %c0_24] : memref<1x1x24x128xf32, #tpu.memory_space<vmem>>, vector<1x1x8x128xf32>
    %61 = vector.shape_cast %60 : vector<1x1x8x128xf32> to vector<8x128xf32>
    %62 = vector.shape_cast %53 : vector<8x128xf32> to vector<1x1x8x128xf32>
    tpu.vector_store %arg4[%c0_22, %c0_23, %c16, %c0_24], %62 {strides = array<i32>} : memref<1x1x24x128xf32, #tpu.memory_space<vmem>>, vector<1x1x8x128xf32>,
    return
  }
  func.func @transform_0(%arg0: i32, %arg1: i32) -> (i32, i32, i32, i32) {
    %c0_i32 = arith.constant 0 : i32
    %c0_i32_0 = arith.constant 0 : i32
    %c0_i32_1 = arith.constant 0 : i32
    return %arg0, %c0_i32, %arg1, %c0_i32_0 : i32, i32, i32, i32
  }
  func.func @transform_1(%arg0: i32, %arg1: i32) -> (i32, i32, i32) {
    %c0_i32 = arith.constant 0 : i32
    %c0_i32_0 = arith.constant 0 : i32
    return %arg0, %arg1, %c0_i32 : i32, i32, i32
  }
  func.func @transform_2(%arg0: i32, %arg1: i32) -> (i32, i32, i32, i32) {
    %c0_i32 = arith.constant 0 : i32
    %c0_i32_0 = arith.constant 0 : i32
    %c0_i32_1 = arith.constant 0 : i32
    return %arg0, %arg1, %c0_i32, %c0_i32_0 : i32, i32, i32, i32
  }
}

</mosaic_0001>

<bundles_post_ra>
// kernel: dice_score.1
= control target key start
LH: loop header
LB: loop body
LE: loop exit
PB: predicated region body
PF: predicated region fallthrough
CT: control target
= control target key end

     0   :  { %s443_s9 = smov 0   ;;  %s445_s10 = smov 0   ;;  %s479_s0 = inlined_call_operand.vmem [shape: f32[2,4,8,128], index: 0, kind: input, shape index: {}]   ;;  %s480_s1 = inlined_call_operand.vmem [shape: s32[2,8,128], index: 1, kind: input, shape index: {}]   ;;  %s481_s2 = inlined_call_operand.vmem [shape: f32[2,1,24,128], index: 2, kind: output, shape index: {}]  }
   0x1   :  { %s447_s11 = smov 0  }
   0x2 LB: > { %s24_s12 = sadd.s32 1, %s421_s10  ;;  %p363_p0 = scmp.ge.s32.totalorder %s425_s11, 1  ;;  %s425_s11 = sphi %s447_s11, %s12_s11   ;;  %s421_s10 = sphi %s445_s10, %s483_s10   ;;  %s417_s9 = sphi %s443_s9, %s482_s9  }
   0x3   : > { %p26_p1 = scmp.ge.s32.totalorder %s24_s12, 2  ;;  %p145_p2 = scmp.lt.s32.totalorder %s425_s11, 3 }
   0x5   : > { %s485_s12 = smov (%p26_p1, %s24_s12), 0  ;;  %p146_p3 = pnand %p363_p0, %p145_p2 }
   0x6   : > { %p181_p4 = scmp.lt.s32.totalorder (!%p146_p3), %s417_s9, 1  ;;  %v205_v0 = vlaneseq (!%p146_p3)  ;;  %v427_v10 = vmov (!%p146_p3), 0.0  }
   0x7   : > { %149 = sbr.rel (%p146_p3) target bundleno = 26 (0x1a), region = 28 }
   0x8   : > { %v206_v1 = vshrl.u32 (!%p146_p3), %v205_v0, 7  ;;  %v209_v2 = vand.u32 (!%p146_p3), 127, %v205_v0 }
   0xa   : > { %v207_v3 = vmul.u32 (!%p146_p3), 128, %v206_v1 }
   0xc   : > { %v210_v4 = vadd.s32 (!%p146_p3), %v209_v2, %v207_v3 }
   0xe   : > { %s487_s9 = smov (!%p181_p4, %s417_s9), 1  ;;  %vm233_vm5 = vcmp.lt.s32.totalorder %v210_v4, 256 }
   0xf   : > { %s376_s13 = sshll.u32 %s487_s9, 5  ;;  %s366_s14 = sshll.u32 %s487_s9, 3 }
  0x10   : > { %s188_s17 = scalar_lea.vmem %s479_s0, %s376_s13  ;;  %s195_s20 = scalar_lea.vmem %s480_s1, %s366_s14 }
  0x11   : > { %s377_s21 = smul.u32 24, %s487_s9  ;;  %v368_v5 = vld [vmem:[%s188_s17 + $0x8] sm:$0xff]  ;;  %v215_v6 = vld [vmem:[%s188_s17] sm:$0xff]  ;;  %v369_v7 = vld [vmem:[%s188_s17 + $0x10] sm:$0xff] }
  0x12   : > { %vm216_vm0 = vcmp.gt.f32.partialorder %v368_v5, %v215_v6  ;;  %vm220_vm1 = vcmp.ge.f32.partialorder %v368_v5, %v369_v7  ;;  %v370_v8 = vld [vmem:[%s188_s17 + $0x18] sm:$0xff]  ;;  %v227_v9 = vld [vmem:[%s195_s20] sm:$0xff] }
  0x13   : > { %vm221_vm2 = vmand %vm216_vm0, %vm220_vm1  ;;  %vm225_vm3 = vcmp.ge.f32.partialorder %v368_v5, %v370_v8  ;;  %vm228_vm4 = vcmp.eq.s32.totalorder %v227_v9, 1  ;;  %s204_s24 = scalar_lea.vmem %s481_s2, %s377_s21 }
  0x14   : > { %vm226_vm6 = vmand %vm221_vm2, %vm225_vm3 }
  0x15   : > { %vm234_vm7 = vmand %vm226_vm6, %vm233_vm5 }
  0x16   : > { %vm235_vm8 = vmand %vm228_vm4, %vm233_vm5  ;;  %v372_v11 = vsel %vm234_vm7, 1.0, %v427_v10 }
  0x17   : > { %vm236_vm9 = vmand %vm234_vm7, %vm235_vm8  ;;  %250 = vst [vmem:[%s204_s24 + $0x8] sm:$0xff] %v372_v11  ;;  %v373_v12 = vsel %vm235_vm8, 1.0, %v427_v10 }
  0x18   : > { %v371_v13 = vsel %vm236_vm9, 1.0, %v427_v10  ;;  %251 = vst [vmem:[%s204_s24 + $0x10] sm:$0xff] %v373_v12 }
  0x19   : > { %249 = vst [vmem:[%s204_s24] sm:$0xff] %v371_v13 }
  0x1a PF: > { %s12_s11 = sadd.s32 1, %s425_s11   ;;  %s482_s9 = smov %s421_s10 }
  0x1b   : > { %p9_p5 = scmp.ge.s32.totalorder %s12_s11, 4   ;;  %s483_s10 = smov %s485_s12 }
  0x1d   :  { %11 = sbr.rel (!%p9_p5) target bundleno = 2 (0x2), region = 64 }

</bundles_post_ra>
